<compile_context>
chip_gen: v7x
topology: tpu7x:2x2x1
jax: 0.10.0
libtpu: 0.0.40
codegen_flags: <defaults>
</compile_context>

<pallas_src>
import jax
import jax.numpy as jnp
from jax import lax
from jax.experimental import pallas as pl
from jax.experimental.pallas import tpu as pltpu


def _make_kernel(n_rows, tile_n, x_transposed):
    """Build the kernel body.  Output block is (P, TILE_N): lane-dense stores."""
    mask_tail = (n_rows % tile_n) != 0  # static: only ragged N pays for masking

    def kernel(x_ref, w_ref, b_ref, o_ref):
        if x_transposed:
            # x_ref: (F, TILE_N), lane-dense. Natural (P,F)@(F,T) MXU shape,
            # no transpose anywhere.
            logits = lax.dot_general(
                w_ref[...], x_ref[...],
                dimension_numbers=(((1,), (0,)), ((), ())),
                preferred_element_type=jnp.float32)
        else:
            # x_ref: (TILE_N, F). Contract over F directly (q@k^T pattern)
            # instead of materializing x^T through the XLU.
            logits = lax.dot_general(
                w_ref[...], x_ref[...],
                dimension_numbers=(((1,), (1,)), ((), ())),
                preferred_element_type=jnp.float32)
        logits = logits + b_ref[...]                      # (P, TILE_N), f32

        if mask_tail:
            # Ragged last tile: neutralize garbage columns (global row >= N)
            # so exp() never sees uninitialized data. Their stores are dropped
            # by the partial out-block anyway; this just keeps NaN/inf out.
            col = lax.broadcasted_iota(jnp.int32, logits.shape, 1)
            col = col + pl.program_id(0) * tile_n
            logits = jnp.where(col < n_rows, logits, 0.0)

        # Numerically stable softmax over the player axis (sublane axis here);
        # matches nn.Softmax(dim=1) on the (N, P) logits.
        # exp -> EUP, sublane reductions -> XLU: both otherwise-idle slots.
        m = jnp.max(logits, axis=0, keepdims=True)
        e = jnp.exp(logits - m)
        denom = jnp.sum(e, axis=0, keepdims=True)
        r = pl.reciprocal(denom, approx=True)   # EUP vrcp
        r = r * (2.0 - denom * r)               # one Newton step -> ~f32 accuracy
        o_ref[...] = (e * r).astype(o_ref.dtype)

    return kernel


def _value_tail_pn(x_arr, w, b, *, x_transposed, tile_n):
    """Shared pallas_call wrapper.  Returns probabilities transposed: (P, N)."""
    if x_transposed:
        F, N = x_arr.shape
    else:
        N, F = x_arr.shape
    P, F2 = w.shape
    assert F == F2 and b.shape == (P,)

    # Row tile: multiple of 128 so the (P, TILE_N) output block is lane-dense,
    # default 2048 to amortize the ~0.35us/grid-step overhead (matters most on
    # v7x's 3.2 TB/s HBM).  Never a single full-N block: even the largest
    # sensible tile double-buffers in a few MiB of VMEM on any generation.
    n_pad = pl.cdiv(N, 128) * 128
    tile_n = max(128, min((int(tile_n) // 128) * 128, n_pad))
    grid = (pl.cdiv(N, tile_n),)

    # bf16 x is a drop-in bandwidth win on the dominant read: match w to x
    # (MXU bf16-in / f32-acc); bias + softmax stay f32.
    w = w.astype(x_arr.dtype)
    b2 = b.reshape(P, 1).astype(jnp.float32)

    if x_transposed:
        x_spec = pl.BlockSpec((F, tile_n), lambda i: (0, i))
    else:
        x_spec = pl.BlockSpec((tile_n, F), lambda i: (i, 0))

    itemsize = jnp.dtype(x_arr.dtype).itemsize
    cost = pl.CostEstimate(
        flops=2 * N * F * P,
        transcendentals=N * P,
        bytes_accessed=N * F * itemsize + P * F * itemsize + (P * N + P) * 4,
    )

    return pl.pallas_call(
        _make_kernel(N, tile_n, x_transposed),
        out_shape=jax.ShapeDtypeStruct((P, N), jnp.float32),
        grid_spec=pltpu.PrefetchScalarGridSpec(
            num_scalar_prefetch=0,
            grid=grid,
            in_specs=[
                x_spec,                                   # x tile (double-buffered)
                pl.BlockSpec((P, F), lambda i: (0, 0)),   # weight (resident)
                pl.BlockSpec((P, 1), lambda i: (0, 0)),   # bias (resident)
            ],
            out_specs=pl.BlockSpec((P, tile_n), lambda i: (0, i)),
        ),
        compiler_params=pltpu.CompilerParams(
            dimension_semantics=("parallel",),   # independent row tiles -> v7x 2-TC sharding
        ),
        cost_estimate=cost,
    )(x_arr, w, b2)


def value_tail(x, w, b, *, tile_n=2048, transpose_output=True):
    """ValueTail forward: softmax(x @ w.T + b, axis=1).

    x: (N, F) activations, w: (P, F) PyTorch-layout weight, b: (P,) bias.
    Returns (N, P) probabilities (module contract), or the lane-dense (P, N)
    slab when transpose_output=False (for consumers that can fuse it).
    """
    out_pn = _value_tail_pn(x, w, b, x_transposed=False, tile_n=tile_n)
    return out_pn.T if transpose_output else out_pn


def value_tail_xt(xt, w, b, *, tile_n=2048, transpose_output=True):
    """Same op for producers that emit x pre-transposed as (F, N).

    With F=32 this layout is lane-dense (no 32->128 lane padding on the
    dominant HBM read) and the kernel needs no relayout at all.
    """
    out_pn = _value_tail_pn(xt, w, b, x_transposed=True, tile_n=tile_n)
    return out_pn.T if transpose_output else out_pn


if __name__ == "__main__":
    # Small shapes consistent with forward(): (N, num_features) -> (N, P).
    N, num_features, num_players = 256, 32, 4

    key = jax.random.PRNGKey(0)
    kx, kw, kb = jax.random.split(key, 3)
    x = jax.random.normal(kx, (N, num_features), dtype=jnp.float32)
    w = jax.random.normal(kw, (num_players, num_features), dtype=jnp.float32) * 0.1
    b = jax.random.normal(kb, (num_players,), dtype=jnp.float32) * 0.1

    ref = jax.nn.softmax(x @ w.T + b[None, :], axis=1)

    # 1) standard (N, F) path; tile_n=128 exercises a 2-step "parallel" grid.
    out = jax.block_until_ready(value_tail(x, w, b, tile_n=128))
    assert out.shape == (N, num_players)
    assert jnp.allclose(out, ref, atol=1e-5, rtol=1e-4)

    # 2) lane-dense producer path: x materialized as (F, N).  (The .T here only
    #    builds the test input; a real producer would emit this layout directly.)
    out_xt = jax.block_until_ready(value_tail_xt(x.T, w, b, tile_n=128))
    assert jnp.allclose(out_xt, ref, atol=1e-5, rtol=1e-4)

    # 3) ragged N (masked tail, non-multiple of 128).
    Nr = 200
    xr = x[:Nr]
    ref_r = jax.nn.softmax(xr @ w.T + b[None, :], axis=1)
    out_r = jax.block_until_ready(value_tail(xr, w, b, tile_n=128))
    assert out_r.shape == (Nr, num_players)
    assert jnp.allclose(out_r, ref_r, atol=1e-5, rtol=1e-4)

    # 4) bf16 activations (halves the dominant HBM read; softmax stays f32).
    x_bf = x.astype(jnp.bfloat16)
    w_bf32 = w.astype(jnp.bfloat16).astype(jnp.float32)
    ref_bf = jax.nn.softmax(x_bf.astype(jnp.float32) @ w_bf32.T + b[None, :], axis=1)
    out_bf = jax.block_until_ready(value_tail(x_bf, w, b, tile_n=128))
    assert jnp.allclose(out_bf, ref_bf, atol=2e-3, rtol=2e-3)

    print("KERNEL_OK")
</pallas_src>

<mosaic_0001>
module attributes {stable_mosaic.version = 11 : i64} {
  func.func @kernel(%arg0: i32, %arg1: memref<128x32xf32, #tpu.memory_space<vmem>>, %arg2: memref<4x32xf32, #tpu.memory_space<vmem>>, %arg3: memref<4x1xf32, #tpu.memory_space<vmem>>, %arg4: memref<4x128xf32, #tpu.memory_space<vmem>>) attributes {dimension_semantics = [#tpu.dimension_semantics<parallel>], iteration_bounds = array<i64: 2>, scalar_prefetch = 0 : i64, scratch_operands = 0 : i64, tpu.core_type = #tpu.core_type<tc>, window_params = [{transform_indices = @transform_0, window_bounds = array<i64: 128, 32>}, {pipeline_mode = #tpu.pipeline_mode<synchronous>, transform_indices = @transform_1, window_bounds = array<i64: 4, 32>}, {pipeline_mode = #tpu.pipeline_mode<synchronous>, transform_indices = @transform_2, window_bounds = array<i64: 4, 1>}, {transform_indices = @transform_3, window_bounds = array<i64: 4, 128>}]} {
    %c0 = arith.constant 0 : index
    %c0_0 = arith.constant 0 : index
    %0 = vector.load %arg2[%c0, %c0_0] : memref<4x32xf32, #tpu.memory_space<vmem>>, vector<4x32xf32>
    %c0_1 = arith.constant 0 : index
    %c0_2 = arith.constant 0 : index
    %1 = vector.load %arg1[%c0_1, %c0_2] : memref<128x32xf32, #tpu.memory_space<vmem>>, vector<128x32xf32>
    %cst = arith.constant dense<0.000000e+00> : vector<4x128xf32>
    %2 = tpu.matmul %0, %1, %cst {dimension_numbers = #tpu.dot_dimension_numbers<[1], [1], [0], [0], [0, 0, 1, 0], [], []>} : vector<4x32xf32>, vector<128x32xf32>, vector<4x128xf32> -> vector<4x128xf32>
    %c0_3 = arith.constant 0 : index
    %c0_4 = arith.constant 0 : index
    %3 = vector.load %arg3[%c0_3, %c0_4] : memref<4x1xf32, #tpu.memory_space<vmem>>, vector<4x1xf32>
    %4 = vector.broadcast %3 : vector<4x1xf32> to vector<4x128xf32>
    %5 = arith.addf %2, %4 : vector<4x128xf32>
    %cst_5 = arith.constant dense<0xFF800000> : vector<128xf32>
    %6 = vector.multi_reduction <maximumf>, %5, %cst_5 [0] : vector<4x128xf32> to vector<128xf32>
    %7 = vector.shape_cast %6 : vector<128xf32> to vector<1x128xf32>
    %8 = vector.broadcast %7 : vector<1x128xf32> to vector<4x128xf32>
    %9 = arith.subf %5, %8 : vector<4x128xf32>
    %10 = math.exp %9 : vector<4x128xf32>
    %cst_6 = arith.constant dense<0.000000e+00> : vector<128xf32>
    %11 = vector.multi_reduction <add>, %10, %cst_6 [0] : vector<4x128xf32> to vector<128xf32>
    %12 = vector.shape_cast %11 : vector<128xf32> to vector<1x128xf32>
    %13 = tpu.reciprocal %12 {approx = true} : vector<1x128xf32> -> vector<1x128xf32>
    %14 = arith.mulf %12, %13 : vector<1x128xf32>
    %cst_7 = arith.constant 2.000000e+00 : f32
    %15 = vector.broadcast %cst_7 : f32 to vector<1x128xf32>
    %16 = arith.subf %15, %14 : vector<1x128xf32>
    %17 = arith.mulf %13, %16 : vector<1x128xf32>
    %18 = vector.broadcast %17 : vector<1x128xf32> to vector<4x128xf32>
    %19 = arith.mulf %10, %18 : vector<4x128xf32>
    %c0_8 = arith.constant 0 : index
    %c0_9 = arith.constant 0 : index
    %20 = vector.load %arg4[%c0_8, %c0_9] : memref<4x128xf32, #tpu.memory_space<vmem>>, vector<4x128xf32>
    tpu.vector_store %arg4[%c0_8, %c0_9], %19 {strides = array<i32>} : memref<4x128xf32, #tpu.memory_space<vmem>>, vector<4x128xf32>,
    return
  }
  func.func @transform_0(%arg0: i32) -> (i32, i32) {
    %c0_i32 = arith.constant 0 : i32
    %c0_i32_0 = arith.constant 0 : i32
    return %arg0, %c0_i32 : i32, i32
  }
  func.func @transform_1(%arg0: i32) -> (i32, i32) {
    %c0_i32 = arith.constant 0 : i32
    %c0_i32_0 = arith.constant 0 : i32
    %c0_i32_1 = arith.constant 0 : i32
    return %c0_i32, %c0_i32_0 : i32, i32
  }
  func.func @transform_2(%arg0: i32) -> (i32, i32) {
    %c0_i32 = arith.constant 0 : i32
    %c0_i32_0 = arith.constant 0 : i32
    %c0_i32_1 = arith.constant 0 : i32
    return %c0_i32, %c0_i32_0 : i32, i32
  }
  func.func @transform_3(%arg0: i32) -> (i32, i32) {
    %c0_i32 = arith.constant 0 : i32
    %c0_i32_0 = arith.constant 0 : i32
    return %c0_i32, %arg0 : i32, i32
  }
}

</mosaic_0001>

<bundles_post_ra>
// kernel: tpu_custom_call.1
= control target key start
LH: loop header
LB: loop body
LE: loop exit
PB: predicated region body
PF: predicated region fallthrough
CT: control target
= control target key end

     0   :  { %8 = vsyncpa [#allocation3], 0  ;;  %s808_s0 = inlined_call_operand.vmem [shape: f32[256,32], index: 0, kind: input, shape index: {}]   ;;  %s809_s1 = inlined_call_operand.vmem [shape: f32[4,32], index: 1, kind: input, shape index: {}]   ;;  %s810_s2 = inlined_call_operand.vmem [shape: f32[4,1], index: 2, kind: input, shape index: {}]   ;;  %s811_s3 = inlined_call_operand.hbm [shape: f32[4,256], index: 3, kind: output, shape index: {}]  }
   0x1   :  { %10 = vsyncpa [#allocation3 + $0x1], 0  ;;  %s662_s12 = smov 0   ;;  %s664_s13 = smov 0  }
   0x2   :  { %s666_s14 = smov 0   ;;  %s668_s15 = smov 0  }
   0x3 LB: > { %s683_s16 = sadd.s32 4294967295, %s635_s15   ;;  %s413_s17 = sadd.s32 4294967294, %s635_s15   ;;  %s635_s15 = sphi %s668_s15, %s819_s15   ;;  %s631_s14 = sphi %s666_s14, %s818_s14   ;;  %s627_s13 = sphi %s664_s13, %s817_s13   ;;  %s623_s12 = sphi %s662_s12, %s816_s12  }
   0x4   : > { %s687_s18 = sadd.s32 1, %s635_s15   ;;  %s91_s19 = sadd.s32 1, %s631_s14 }
   0x5   : > { %s88_s20 = ssub.s32 %s635_s15, %s687_s18  ;;  %p101_p0 = scmp.ne.s32.totalorder %s631_s14, %s627_s13 }
   0x6   : > { %p89_p1 = scmp.eq.s32.totalorder %s88_s20, 0  ;;  %p102_p2 = scmp.eq.s32.totalorder %s683_s16, 1 }
   0x7   : > { %p107_p3 = scmp.ne.s32.totalorder %s627_s13, %s623_s12  ;;  %p108_p4 = scmp.eq.s32.totalorder %s413_s17, 1 }
   0x8   : > { %s698_s21 = scalar_select %p89_p1, %s631_s14, %s91_s19  }
   0x9   : > { %p700_p5 = por %p102_p2, %p101_p0  ;;  %p704_p6 = por %p108_p4, %p107_p3 }
   0xa   : > { %p416_p7 = scmp.ge.s32.totalorder %s635_s15, 1  ;;  %p141_p8 = scmp.lt.s32.totalorder %s635_s15, 3 }
   0xc   : > { %p142_p9 = pnand %p416_p7, %p141_p8 }
   0xd   : > { %s418_s24 = sshll.u32 (!%p142_p9), %s683_s16, 4  ;;  %v637_v0 = vmov (!%p142_p9), 0.0|0.0   ;;  %vm638_vm0 = vmmov (!%p142_p9), 0   ;;  %v639_v1 = vmov (!%p142_p9), 0.0   ;;  %v188_v2 = vld [vmem:[%s810_s2] sm:$0xf] (!%p142_p9) }
   0xe   : > { %145 = sbr.rel (%p142_p9) target bundleno = 378 (0x17a), region = 32  ;;  %493 = vmatprep.subr.bf16.mxu0 (!%p142_p9), %v637_v0  ;;  %p166_p10 = scmp.lt.s32.totalorder (!%p142_p9), %s418_s24, 31  ;;  %490 = vmatprep.mubr.msk.f32.mxu0 (!%p142_p9), %vm638_vm0, %v639_v1  ;;  %v640_v3 = vmov (!%p142_p9), 0   ;;  %vm194_vm1 = vcmask (!%p142_p9), 261120   ;;  %v171_v29 = vld [vmem:[%s809_s1] sm:$0xf] (!%p142_p9) }
   0xf   : > { %568 = vset.pattern.permute.xlu0 (!%p142_p9), %v640_v3  ;;  %vm723_vm2 = vmpackc.low (!%p142_p9), %vm194_vm1, %vm194_vm1  ;;  %vm316_vm3 = vcmask (!%p142_p9), 1043456   ;;  %s162_s6 = sand.u32 (!%p142_p9), 1, %s627_s13   ;;  %s438_s8 = sshll.u32 (!%p142_p9), %s683_s16, 6 }
  0x10   : > { %191 = vperm.xlu0 (!%p142_p9), %568, %v188_v2   ;;  %s417_s7 = sshll.u32 (!%p142_p9), %s162_s6, 2  ;;  %s766_s19 = scalar_lea.hbm (!%p142_p9), %s811_s3, %s438_s8 }
  0x11   : > { %s164_s9 = scalar_lea.vmem (!%p142_p9), [#allocation2], %s417_s7  ;;  %s341_s20 = scalar_lea.sflag (!%p142_p9), [#allocation3], %s162_s6 }
  0x12   : > { %s354_s10 = sshll.u32 (!%p142_p9), %s164_s9, 4  ;;  %s641_s16 = smov (!%p142_p9), [#allocation2]   ;;  %s768_s10 = int_to_ptr.vmem [resolvable:$true] %s354_s10 }
  0x13   : > { %s577_s25 = sshll.u32 (!%p142_p9), %s641_s16, 4  ;;  %s578_s25 = int_to_ptr.vmem [resolvable:$false] %s577_s25 }
  0x14   : > { %s579_s26 = scalar_lea.vmem (!%p142_p9), %s578_s25, 128  ;;  %p580_p0 = scmp.lt.s32.totalorder (!%p142_p9), %s768_s10, %s578_s25 }
  0x15   : > { %s821_s24 = smov (!%p166_p10, %s418_s24), 31 }
  0x16   : > { %s419_s27 = sshll.u32 %s821_s24, 3  ;;  %s573_s24 = scalar_lea.vmem %s768_s10, 64 }
  0x17   : > { %s717_s30 = scalar_lea.vmem %s808_s0, %s419_s27  ;;  %p574_p11 = scmp.ne.s32.totalorder %s768_s10, %s573_s24 }
  0x18   : > { %v172_v4 = vld [vmem:[%s717_s30] sm:$0xff]  ;;  %v173_v5 = vld [vmem:[%s717_s30 + $0x8] sm:$0xff]  ;;  %v174_v8 = vld [vmem:[%s717_s30 + $0x10] sm:$0xff]  ;;  %p581_p1 = scmp.lt.s32.totalorder %s579_s26, %s573_s24 }
  0x19   : > { %v494_v7 = vpack.c.bf16 %v173_v5, %v172_v4  ;;  %v175_v9 = vld [vmem:[%s717_s30 + $0x18] sm:$0xff]  ;;  %v176_v11 = vld [vmem:[%s717_s30 + $0x20] sm:$0xff]  ;;  %v177_v12 = vld [vmem:[%s717_s30 + $0x28] sm:$0xff]  ;;  %p575_p12 = pnand %p574_p11, %p700_p5 }
  0x1a   : > { %v498_v10 = vpack.c.bf16 %v175_v9, %v174_v8  ;;  %v502_v13 = vpack.c.bf16 %v177_v12, %v176_v11  ;;  %v178_v14 = vld [vmem:[%s717_s30 + $0x30] sm:$0xff]  ;;  %v179_v15 = vld [vmem:[%s717_s30 + $0x38] sm:$0xff]  ;;  %v180_v17 = vld [vmem:[%s717_s30 + $0x40] sm:$0xff]  ;;  %p582_p2 = por %p581_p1, %p580_p0 }
  0x1b   : > { %496 = vmatpush3.bf16.xpose.msk.msra.mxu0 %vm723_vm2, %v494_v7  ;;  %v506_v16 = vpack.c.bf16 %v179_v15, %v178_v14  ;;  %v181_v18 = vld [vmem:[%s717_s30 + $0x48] sm:$0xff]  ;;  %v182_v20 = vld [vmem:[%s717_s30 + $0x50] sm:$0xff]  ;;  %v183_v21 = vld [vmem:[%s717_s30 + $0x58] sm:$0xff]  ;;  %p576_p13 = pneg %p575_p12 }
  0x1c   : > { %497 = vmatprep.subr.bf16.mxu0 %v637_v0  ;;  %v510_v19 = vpack.c.bf16 %v181_v18, %v180_v17  ;;  %v514_v22 = vpack.c.bf16 %v183_v21, %v182_v20  ;;  %v184_v23 = vld [vmem:[%s717_s30 + $0x60] sm:$0xff]  ;;  %v185_v24 = vld [vmem:[%s717_s30 + $0x68] sm:$0xff]  ;;  %v186_v26 = vld [vmem:[%s717_s30 + $0x70] sm:$0xff] }
  0x1d   : > { %v518_v25 = vpack.c.bf16 %v185_v24, %v184_v23  ;;  %v187_v27 = vld [vmem:[%s717_s30 + $0x78] sm:$0xff]  ;;  %p583_p3 = pnand %p582_p2, %p576_p13 }
  0x1e   : > { %v522_v28 = vpack.c.bf16 %v187_v27, %v186_v26 }
  0x23   : > { %500 = vmatpush3.bf16.xpose.msk.msra.mxu0 %vm723_vm2, %v498_v10 }
  0x24   : > { %501 = vmatprep.subr.bf16.mxu0 %v637_v0 }
  0x2b   : > { %504 = vmatpush3.bf16.xpose.msk.msra.mxu0 %vm723_vm2, %v502_v13 }
  0x2c   : > { %505 = vmatprep.subr.bf16.mxu0 %v637_v0 }
  0x33   : > { %508 = vmatpush3.bf16.xpose.msk.msra.mxu0 %vm723_vm2, %v506_v16 }
  0x34   : > { %509 = vmatprep.subr.bf16.mxu0 %v637_v0 }
  0x3b   : > { %512 = vmatpush3.bf16.xpose.msk.msra.mxu0 %vm723_vm2, %v510_v19 }
  0x3c   : > { %513 = vmatprep.subr.bf16.mxu0 %v637_v0 }
  0x43   : > { %516 = vmatpush3.bf16.xpose.msk.msra.mxu0 %vm723_vm2, %v514_v22 }
  0x44   : > { %517 = vmatprep.subr.bf16.mxu0 %v637_v0 }
  0x4b   : > { %520 = vmatpush3.bf16.xpose.msk.msra.mxu0 %vm723_vm2, %v518_v25 }
  0x4c   : > { %521 = vmatprep.subr.bf16.mxu0 %v637_v0 }
  0x53   : > { %524 = vmatpush3.bf16.xpose.msk.msra.mxu0 %vm723_vm2, %v522_v28 }
  0x5a   : > { %491 = vmatmul.mubr.msk.f32.vlgmr.msra.gmra.mrb[0].mxu0 %vm194_vm1, %v171_v29 }
  0x8f   : > { %v192_v30 = vpop.permute.xlu0 %191 }
 0x12d   : > { %v312_v31 = vpop.f32.mrb[0].mxu0 }
 0x12e   : > { %v313_v32 = vadd.f32 %v312_v31, %v192_v30  ;;  %v492_v33 = vpop.f32.mrb[1].mxu0 }
 0x130   : > { %v317_v34 = vsel %vm316_vm3, %v313_v32, -inf }
 0x131   : > { %v318_v35 = vrot.slane %v317_v34, 4 }
 0x133   : > { %v319_v36 = vmax.f32 %v317_v34, %v318_v35 }
 0x135   : > { %v320_v37 = vrot.slane %v319_v36, 2 }
 0x137   : > { %v321_v38 = vmax.f32 %v319_v36, %v320_v37 }
 0x139   : > { %v322_v39 = vrot.slane %v321_v38, 1 }
 0x13b   : > { %v323_v40 = vmax.f32 %v321_v38, %v322_v39 }
 0x13d   : > { %v324_v41 = vsub.f32 %v313_v32, %v323_v40 }
 0x13f   : > { %v325_v42 = vmul.f32 1.442695, %v324_v41 }
 0x141   : > { %569 = vpow2.f32 %v325_v42 }
 0x14b   : > { %v570_v43 = vpop.eup %569 }
 0x14c   : > { %v327_v44 = vsel %vm316_vm3, %v570_v43, 0.0 }
 0x14d   : > { %v328_v45 = vrot.slane %v327_v44, 4 }
 0x14f   : > { %v329_v46 = vadd.f32 %v328_v45, %v327_v44 }
 0x151   : > { %v330_v47 = vrot.slane %v329_v46, 2 }
 0x153   : > { %v331_v48 = vadd.f32 %v330_v47, %v329_v46 }
 0x155   : > { %v332_v49 = vrot.slane %v331_v48, 1 }
 0x157   : > { %v333_v50 = vadd.f32 %v332_v49, %v331_v48 }
 0x159   : > { %571 = vrcp.f32 %v333_v50 }
 0x163   : > { %v572_v51 = vpop.eup %571 }
 0x164   : > { %v335_v52 = vmul.f32 %v572_v51, %v333_v50 }
 0x166   : > { %v336_v53 = vsub.f32 2.0, %v335_v52 }
 0x168   : > { %v337_v54 = vmul.f32 %v572_v51, %v336_v53 }
 0x16a   : > { %v338_v55 = vmul.f32 %v570_v43, %v337_v54 }
 0x16c   : > { %339 = vst [vmem:[%s164_s9] sm:$0xf] %v338_v55 }
 0x16d   : > { %586 = shalt.err (!%p583_p3)
}
 0x16e   : > { %s587_s27 = scalar_lea.hbm %s766_s19, 64  ;;  %s591_s30 = scalar_lea.hbm %s811_s3, 128 }
 0x16f   : > { %p588_p4 = scmp.ne.s32.totalorder %s766_s19, %s587_s27  ;;  %p592_p9 = scmp.lt.u32.totalorder %s766_s19, %s811_s3 }
 0x170   : > { %p593_p10 = scmp.lt.u32.totalorder %s591_s30, %s587_s27  ;;  %p595_p12 = scmp.lt.u32.totalorder %s587_s27, %s766_s19 }
 0x171   : > { %p589_p7 = pnand %p588_p4, %p700_p5 }
 0x172   : > { %p594_p11 = por %p593_p10, %p592_p9 }
 0x173   : > { %p590_p8 = pneg %p589_p7 }
 0x174   : > { %p596_p13 = por %p595_p12, %p594_p11 }
 0x176   : > { %p597_p0 = pnand %p596_p13, %p590_p8 }
 0x178   : > { %600 = shalt.err (!%p597_p0)
}
 0x179   : > { %525 = dma.vmem_to_hbm [thread:$0]  (%p700_p5), %s768_s10, 64, %s766_s19, %s341_s20  }
 0x17a PF: > { %p531_p1 = scmp.ge.s32.totalorder %s635_s15, 2  ;;  %s366_s6 = sand.u32 1, %s623_s12  }
 0x17b   : > { %s367_s7 = scalar_lea.sflag [#allocation3], %s366_s6 }
 0x17c   : > { %p528_p2 = pnand %p531_p1, %p704_p6 }
 0x17e   : > { %618 = dma.done.wait (!%p528_p2), %s367_s7, 64  }
 0x17f   : > { %620 = vsyncadd (!%p528_p2), %s367_s7, 4294967232  ;;  %p13_p3 = scmp.ge.s32.totalorder %s687_s18, 4   ;;  %s816_s12 = smov %s627_s13 }
 0x180   : > { %s817_s13 = smov %s631_s14  ;;  %s818_s14 = smov %s698_s21 }
 0x181   : > { %s819_s15 = smov %s687_s18  ;;  %15 = sbr.rel (!%p13_p3) target bundleno = 3 (0x3), region = 67 }
 0x188   :  { %372 = vsyncpa [#allocation3], 1 }
 0x189   :  { %374 = vsyncpa [#allocation3 + $0x1], 1 }

</bundles_post_ra>
